<compile_context>
chip_gen: v5e
topology: v5e:2x2
jax: 0.10.0
libtpu: 0.0.40
codegen_flags: <defaults>
</compile_context>

<pallas_src>
import functools
import math

import jax
import jax.numpy as jnp
from jax import lax
from jax.experimental import pallas as pl
from jax.experimental.pallas import tpu as pltpu


# ----------------------------- fused QKV projection ------------------------- #

def _qkv_proj_kernel(xq_ref, xk_ref, xv_ref, w_ref, b_ref,
                     qo_ref, ko_ref, vo_ref):
    # w_ref: (3, in_dim, Fa), b_ref: (3, 1, Fa); leading-dim indexing is cheap.
    # f32 matmul (projection is tiny vs. the O(N^2) attention); bf16 outputs so
    # the attention kernel's Q/K/V DMA and MXU operands are half-width.
    qo_ref[...] = (jnp.dot(xq_ref[...], w_ref[0],
                           preferred_element_type=jnp.float32)
                   + b_ref[0]).astype(qo_ref.dtype)
    ko_ref[...] = (jnp.dot(xk_ref[...], w_ref[1],
                           preferred_element_type=jnp.float32)
                   + b_ref[1]).astype(ko_ref.dtype)
    vo_ref[...] = (jnp.dot(xv_ref[...], w_ref[2],
                           preferred_element_type=jnp.float32)
                   + b_ref[2]).astype(vo_ref.dtype)


def qkv_projection(xq, xk, xv, w_qkv, b_qkv, *, tile_m=512):
    n, in_dim = xq.shape
    fa = w_qkv.shape[-1]
    tm = _fit_tile(n, tile_m, min_tiles=2)

    x_spec = pl.BlockSpec((tm, in_dim), lambda i: (i, 0))
    out_spec = pl.BlockSpec((tm, fa), lambda i: (i, 0))
    out_sds = jax.ShapeDtypeStruct((n, fa), jnp.bfloat16)

    # TODO(synk): for very large in_dim*Fa, tile the Fa axis with a second grid
    # dimension so the (3, in_dim, Fa) weight block never exceeds scoped VMEM.
    return pl.pallas_call(
        _qkv_proj_kernel,
        out_shape=(out_sds, out_sds, out_sds),
        grid=(pl.cdiv(n, tm),),
        in_specs=[
            x_spec, x_spec, x_spec,
            pl.BlockSpec((3, in_dim, fa), lambda i: (0, 0, 0)),
            pl.BlockSpec((3, 1, fa), lambda i: (0, 0, 0)),
        ],
        out_specs=(out_spec, out_spec, out_spec),
        compiler_params=pltpu.CompilerParams(
            dimension_semantics=("parallel",)),
    )(xq, xk, xv, w_qkv, b_qkv)


# --------------------------- tiled graph attention -------------------------- #

def _graph_attn_kernel(flags_ref, q_ref, k_ref, v_ref, a_ref, o_ref, acc_ref,
                       *, inv_scale, num_heads, head_dim):
    # grid = (dst_tiles, src_tiles); src axis (1) is the reduction axis.
    i = pl.program_id(0)
    j = pl.program_id(1)
    nj = pl.num_programs(1)
    dpad = head_dim + 1          # per-head layout: [D real cols | 1 "ones" col]

    @pl.when(j == 0)
    def _init():
        acc_ref[...] = jnp.zeros_like(acc_ref)

    # Block-sparse skip: all-zero adjacency tiles pay no exp / MXU cost.
    @pl.when(flags_ref[i * nj + j] != 0)
    def _compute():
        # Edge-mask tile (tm, tk): loaded once per (dst, src) tile, reused by
        # all heads.  bf16 adjacency (0/1 exact) is accepted and upcast here.
        adj = a_ref[...].astype(jnp.float32)

        updates = []
        for h in range(num_heads):          # static unroll; H is small
            lo = h * dpad
            qh = q_ref[:, lo:lo + dpad]     # (tm, D+1) bf16, extra col = 0
            kh = k_ref[:, lo:lo + dpad]     # (tk, D+1) bf16, extra col = 0
            vh = v_ref[:, lo:lo + dpad]     # (tk, D+1) bf16, extra col = 1

            # score[d, s] = K_h[s] . Q_h[d]  (src_dot_dst); last-dim contraction
            # on both operands -> no explicit transpose.  Extra padded column is
            # 0*0 so the result is exact.
            s = lax.dot_general(qh, kh, (((1,), (1,)), ((), ())),
                                preferred_element_type=jnp.float32)   # (tm, tk)
            # scaled_exp with clamp (f32 elementwise), masked to real edges.
            p = jnp.exp(jnp.clip(s * inv_scale, -5.0, 5.0)) * adj
            # One matmul yields wV (first D cols) and z (last col) per head.
            pvz = jnp.dot(p.astype(jnp.bfloat16), vh,
                          preferred_element_type=jnp.float32)         # (tm, D+1)
            updates.append(pvz)

        # Single lane-dense accumulate per grid step.
        acc_ref[...] += jnp.concatenate(updates, axis=-1)

    @pl.when(j == nj - 1)
    def _finalize():
        outs = []
        for h in range(num_heads):
            lo = h * dpad
            wv = acc_ref[:, lo:lo + head_dim]                # (tm, D)
            z = acc_ref[:, lo + head_dim:lo + dpad]          # (tm, 1)
            # Matches PyTorch/DGL: a dst node with no in-edges gives z == 0
            # -> inf/nan (no eps added).  Reciprocal-multiply, once per head.
            outs.append(wv * (1.0 / z))
        # One lane-dense (tm, H*D) store.
        o_ref[...] = jnp.concatenate(outs, axis=-1).astype(o_ref.dtype)


def graph_multihead_attention(q_a, k_a, v_a, adj, num_heads, out_dim,
                              *, tile_m=256, tile_k=512):
    # q_a/k_a/v_a: (N, H*(D+1)) bf16 lane-dense (ones-augmented V);
    # adj: (N_dst, N_src) float/bf16 edge mask.
    n, fa = q_a.shape
    dpad = out_dim + 1
    assert fa == num_heads * dpad
    f = num_heads * out_dim
    tm = _fit_tile(n, tile_m, min_tiles=2)   # >=2 dst tiles when possible (v7x)
    tk = _fit_tile(n, tile_k)
    ni, nj = n // tm, n // tk
    inv_scale = 1.0 / float(math.sqrt(out_dim))

    # Per-(dst_tile, src_tile) nonzero flags for block-sparse skipping.
    flags = jnp.any(adj.reshape(ni, tm, nj, tk) != 0,
                    axis=(1, 3)).astype(jnp.int32).reshape(-1)

    kernel = functools.partial(_graph_attn_kernel, inv_scale=inv_scale,
                               num_heads=num_heads, head_dim=out_dim)

    # NOTE(v7x): tile defaults comfortably fit the 32 MiB scoped-VMEM default
    # (adj tile 256*512*2B double-buffered + small Q/K/V tiles + (tm,Fa) acc);
    # shrink tk first if larger configurations push past it.
    return pl.pallas_call(
        kernel,
        out_shape=jax.ShapeDtypeStruct((n, f), jnp.float32),
        grid_spec=pltpu.PrefetchScalarGridSpec(
            num_scalar_prefetch=1,
            grid=(ni, nj),
            in_specs=[
                pl.BlockSpec((tm, fa), lambda i, j, fl: (i, 0)),   # Q rows = dst
                pl.BlockSpec((tk, fa), lambda i, j, fl: (j, 0)),   # K rows = src
                pl.BlockSpec((tk, fa), lambda i, j, fl: (j, 0)),   # V rows = src
                pl.BlockSpec((tm, tk), lambda i, j, fl: (i, j)),   # adjacency
            ],
            # Output block fixed across the src axis -> stays VMEM-resident;
            # written once at the last reduction step as a lane-dense slab.
            out_specs=pl.BlockSpec((tm, f), lambda i, j, fl: (i, 0)),
            scratch_shapes=[
                pltpu.VMEM((tm, fa), jnp.float32),   # fused wV|z accumulator
            ],
        ),
        compiler_params=pltpu.CompilerParams(
            dimension_semantics=("parallel", "arbitrary")),
    )(flags, q_a, k_a, v_a, adj)


def _fit_tile(n, preferred, *, min_tiles=1):
    """Largest tile <= preferred that evenly divides n (falls back to n); then
    optionally halved so the (parallel) grid axis has >= min_tiles tiles."""
    if n <= preferred:
        t = n
    else:
        t = preferred
        while t >= 8 and n % t != 0:
            t //= 2
        if t < 8 or n % t != 0:
            t = n  # TODO(synk): ragged N (no aligned divisor) needs pad/mask.
    while (min_tiles > 1 and n // t < min_tiles and t % 16 == 0
           and n % (t // 2) == 0):
        t //= 2
    return t


# ------------------------------ module wrapper ------------------------------ #

def init_params(key, in_dim, out_dim, num_heads, use_bias=True):
    """nn.Linear-style init (uniform +-1/sqrt(in_dim)).  Weights/biases are
    stored stacked AND "ones-augmented": per head, columns [0:D] are the real
    projection and column D is an all-zero weight column whose bias is 1.0 for
    V (so z falls out of the s@V matmul) and 0.0 for Q/K (exact no-op)."""
    bound = 1.0 / math.sqrt(in_dim)
    dpad = out_dim + 1
    ks = jax.random.split(key, 6)
    w = jnp.zeros((3, in_dim, num_heads, dpad), jnp.float32)
    b = jnp.zeros((3, 1, num_heads, dpad), jnp.float32)
    for idx in range(3):
        wi = jax.random.uniform(ks[idx], (in_dim, num_heads, out_dim),
                                jnp.float32, -bound, bound)
        w = w.at[idx, :, :, :out_dim].set(wi)
        if use_bias:
            bi = jax.random.uniform(ks[3 + idx], (1, num_heads, out_dim),
                                    jnp.float32, -bound, bound)
            b = b.at[idx, :, :, :out_dim].set(bi)
    b = b.at[2, :, :, out_dim].set(1.0)   # V "ones" column -> z via the MXU
    fa = num_heads * dpad
    return {"w_qkv": w.reshape(3, in_dim, fa),
            "b_qkv": b.reshape(3, 1, fa)}


def multi_head_attention_forward(params, adj, query, key, value,
                                 num_heads, out_dim):
    n = query.shape[0]
    # One launch for all three projections (query/key/value may be distinct
    # tensors per the module signature, so they stay separate operands).
    q_a, k_a, v_a = qkv_projection(query, key, value,
                                   params["w_qkv"], params["b_qkv"])
    # (N, H*(D+1)) kept lane-dense -> no transposes; heads are lane slices.
    out_flat = graph_multihead_attention(q_a, k_a, v_a, adj,
                                         num_heads, out_dim)
    return out_flat.reshape(n, num_heads, out_dim)   # free reshape


# ------------------------------ pure-JAX reference -------------------------- #

def reference_forward(params, adj, query, key, value, num_heads, out_dim):
    """Exact f32 reference with the PyTorch module's semantics."""
    dpad = out_dim + 1
    in_dim = query.shape[1]
    w = params["w_qkv"].reshape(3, in_dim, num_heads, dpad)[..., :out_dim]
    b = params["b_qkv"].reshape(3, 1, num_heads, dpad)[..., :out_dim]
    adj_f = adj.astype(jnp.float32)
    q_h = jnp.einsum("ni,ihd->nhd", query, w[0]) + b[0]
    k_h = jnp.einsum("ni,ihd->nhd", key, w[1]) + b[1]
    v_h = jnp.einsum("ni,ihd->nhd", value, w[2]) + b[2]
    # score[d, s, h] = K_h[s, h] . Q_h[d, h]
    s = jnp.einsum("shd,nhd->nsh", k_h, q_h)
    s = jnp.exp(jnp.clip(s / math.sqrt(out_dim), -5.0, 5.0)) * adj_f[:, :, None]
    wv_ = jnp.einsum("nsh,shd->nhd", s, v_h)
    z = jnp.sum(s, axis=1)[:, :, None]
    return wv_ / z


# ----------------------------------- main ----------------------------------- #

if __name__ == "__main__":
    N, in_dim, out_dim, num_heads = 8, 32, 16, 2

    root = jax.random.PRNGKey(0)
    k_param, k_q, k_k, k_v = jax.random.split(root, 4)

    params = init_params(k_param, in_dim, out_dim, num_heads, use_bias=True)

    query = jax.random.normal(k_q, (N, in_dim), jnp.float32)
    key_f = jax.random.normal(k_k, (N, in_dim), jnp.float32)
    value = jax.random.normal(k_v, (N, in_dim), jnp.float32)

    # Deterministic graph: ring (src = (d-1) mod N -> dst = d) plus self loops.
    adj = jnp.clip(
        jnp.eye(N, dtype=jnp.float32)
        + jnp.eye(N, k=-1, dtype=jnp.float32)
        + jnp.eye(N, k=N - 1, dtype=jnp.float32),
        0.0, 1.0)
    # 0/1 is exact in bf16; halves the dominant (N,N) adjacency HBM traffic.
    adj_bf16 = adj.astype(jnp.bfloat16)

    out = multi_head_attention_forward(params, adj_bf16, query, key_f, value,
                                       num_heads, out_dim)
    out = jax.block_until_ready(out)

    ref = reference_forward(params, adj, query, key_f, value,
                            num_heads, out_dim)
    assert out.shape == (N, num_heads, out_dim)
    # Tolerance accounts for bf16 MXU operands (Q/K/V and the probability tile);
    # accumulation is f32 and scores are clamped to [-5, 5], so drift is small.
    assert jnp.allclose(out, ref, atol=5e-2, rtol=5e-2), "mismatch vs reference"

    print("KERNEL_OK")
</pallas_src>

<mosaic_0001>
module attributes {stable_mosaic.version = 11 : i64} {
  func.func @_qkv_proj_kernel(%arg0: i32, %arg1: memref<8x32xf32, #tpu.memory_space<vmem>>, %arg2: memref<8x32xf32, #tpu.memory_space<vmem>>, %arg3: memref<8x32xf32, #tpu.memory_space<vmem>>, %arg4: memref<3x32x34xf32, #tpu.memory_space<vmem>>, %arg5: memref<3x1x34xf32, #tpu.memory_space<vmem>>, %arg6: memref<8x34xbf16, #tpu.memory_space<vmem>>, %arg7: memref<8x34xbf16, #tpu.memory_space<vmem>>, %arg8: memref<8x34xbf16, #tpu.memory_space<vmem>>) attributes {dimension_semantics = [#tpu.dimension_semantics<parallel>], iteration_bounds = array<i64: 1>, scalar_prefetch = 0 : i64, scratch_operands = 0 : i64, tpu.core_type = #tpu.core_type<tc>, window_params = [{transform_indices = @transform_0, window_bounds = array<i64: 8, 32>}, {transform_indices = @transform_1, window_bounds = array<i64: 8, 32>}, {transform_indices = @transform_2, window_bounds = array<i64: 8, 32>}, {pipeline_mode = #tpu.pipeline_mode<synchronous>, transform_indices = @transform_3, window_bounds = array<i64: 3, 32, 34>}, {pipeline_mode = #tpu.pipeline_mode<synchronous>, transform_indices = @transform_4, window_bounds = array<i64: 3, 1, 34>}, {transform_indices = @transform_5, window_bounds = array<i64: 8, 34>}, {transform_indices = @transform_6, window_bounds = array<i64: 8, 34>}, {transform_indices = @transform_7, window_bounds = array<i64: 8, 34>}]} {
    %c0 = arith.constant 0 : index
    %c0_0 = arith.constant 0 : index
    %0 = vector.load %arg1[%c0, %c0_0] : memref<8x32xf32, #tpu.memory_space<vmem>>, vector<8x32xf32>
    %c0_1 = arith.constant 0 : index
    %c0_2 = arith.constant 0 : index
    %c0_3 = arith.constant 0 : index
    %1 = vector.load %arg4[%c0_1, %c0_2, %c0_3] : memref<3x32x34xf32, #tpu.memory_space<vmem>>, vector<1x32x34xf32>
    %2 = vector.shape_cast %1 : vector<1x32x34xf32> to vector<32x34xf32>
    %cst = arith.constant dense<0.000000e+00> : vector<8x34xf32>
    %3 = tpu.matmul %0, %2, %cst {dimension_numbers = #tpu.dot_dimension_numbers<[1], [0], [0], [1], [0, 0, 1, 1], [], []>} : vector<8x32xf32>, vector<32x34xf32>, vector<8x34xf32> -> vector<8x34xf32>
    %c0_4 = arith.constant 0 : index
    %c0_5 = arith.constant 0 : index
    %c0_6 = arith.constant 0 : index
    %4 = vector.load %arg5[%c0_4, %c0_5, %c0_6] : memref<3x1x34xf32, #tpu.memory_space<vmem>>, vector<1x1x34xf32>
    %5 = vector.shape_cast %4 : vector<1x1x34xf32> to vector<1x34xf32>
    %6 = vector.broadcast %5 : vector<1x34xf32> to vector<8x34xf32>
    %7 = arith.addf %3, %6 : vector<8x34xf32>
    %8 = arith.truncf %7 : vector<8x34xf32> to vector<8x34xbf16>
    %c0_7 = arith.constant 0 : index
    %c0_8 = arith.constant 0 : index
    %9 = vector.load %arg6[%c0_7, %c0_8] : memref<8x34xbf16, #tpu.memory_space<vmem>>, vector<8x34xbf16>
    tpu.vector_store %arg6[%c0_7, %c0_8], %8 {strides = array<i32>} : memref<8x34xbf16, #tpu.memory_space<vmem>>, vector<8x34xbf16>,
    %c0_9 = arith.constant 0 : index
    %c0_10 = arith.constant 0 : index
    %10 = vector.load %arg2[%c0_9, %c0_10] : memref<8x32xf32, #tpu.memory_space<vmem>>, vector<8x32xf32>
    %c1 = arith.constant 1 : index
    %c0_11 = arith.constant 0 : index
    %c0_12 = arith.constant 0 : index
    %11 = vector.load %arg4[%c1, %c0_11, %c0_12] : memref<3x32x34xf32, #tpu.memory_space<vmem>>, vector<1x32x34xf32>
    %12 = vector.shape_cast %11 : vector<1x32x34xf32> to vector<32x34xf32>
    %cst_13 = arith.constant dense<0.000000e+00> : vector<8x34xf32>
    %13 = tpu.matmul %10, %12, %cst_13 {dimension_numbers = #tpu.dot_dimension_numbers<[1], [0], [0], [1], [0, 0, 1, 1], [], []>} : vector<8x32xf32>, vector<32x34xf32>, vector<8x34xf32> -> vector<8x34xf32>
    %c1_14 = arith.constant 1 : index
    %c0_15 = arith.constant 0 : index
    %c0_16 = arith.constant 0 : index
    %14 = vector.load %arg5[%c1_14, %c0_15, %c0_16] : memref<3x1x34xf32, #tpu.memory_space<vmem>>, vector<1x1x34xf32>
    %15 = vector.shape_cast %14 : vector<1x1x34xf32> to vector<1x34xf32>
    %16 = vector.broadcast %15 : vector<1x34xf32> to vector<8x34xf32>
    %17 = arith.addf %13, %16 : vector<8x34xf32>
    %18 = arith.truncf %17 : vector<8x34xf32> to vector<8x34xbf16>
    %c0_17 = arith.constant 0 : index
    %c0_18 = arith.constant 0 : index
    %19 = vector.load %arg7[%c0_17, %c0_18] : memref<8x34xbf16, #tpu.memory_space<vmem>>, vector<8x34xbf16>
    tpu.vector_store %arg7[%c0_17, %c0_18], %18 {strides = array<i32>} : memref<8x34xbf16, #tpu.memory_space<vmem>>, vector<8x34xbf16>,
    %c0_19 = arith.constant 0 : index
    %c0_20 = arith.constant 0 : index
    %20 = vector.load %arg3[%c0_19, %c0_20] : memref<8x32xf32, #tpu.memory_space<vmem>>, vector<8x32xf32>
    %c2 = arith.constant 2 : index
    %c0_21 = arith.constant 0 : index
    %c0_22 = arith.constant 0 : index
    %21 = vector.load %arg4[%c2, %c0_21, %c0_22] : memref<3x32x34xf32, #tpu.memory_space<vmem>>, vector<1x32x34xf32>
    %22 = vector.shape_cast %21 : vector<1x32x34xf32> to vector<32x34xf32>
    %cst_23 = arith.constant dense<0.000000e+00> : vector<8x34xf32>
    %23 = tpu.matmul %20, %22, %cst_23 {dimension_numbers = #tpu.dot_dimension_numbers<[1], [0], [0], [1], [0, 0, 1, 1], [], []>} : vector<8x32xf32>, vector<32x34xf32>, vector<8x34xf32> -> vector<8x34xf32>
    %c2_24 = arith.constant 2 : index
    %c0_25 = arith.constant 0 : index
    %c0_26 = arith.constant 0 : index
    %24 = vector.load %arg5[%c2_24, %c0_25, %c0_26] : memref<3x1x34xf32, #tpu.memory_space<vmem>>, vector<1x1x34xf32>
    %25 = vector.shape_cast %24 : vector<1x1x34xf32> to vector<1x34xf32>
    %26 = vector.broadcast %25 : vector<1x34xf32> to vector<8x34xf32>
    %27 = arith.addf %23, %26 : vector<8x34xf32>
    %28 = arith.truncf %27 : vector<8x34xf32> to vector<8x34xbf16>
    %c0_27 = arith.constant 0 : index
    %c0_28 = arith.constant 0 : index
    %29 = vector.load %arg8[%c0_27, %c0_28] : memref<8x34xbf16, #tpu.memory_space<vmem>>, vector<8x34xbf16>
    tpu.vector_store %arg8[%c0_27, %c0_28], %28 {strides = array<i32>} : memref<8x34xbf16, #tpu.memory_space<vmem>>, vector<8x34xbf16>,
    return
  }
  func.func @transform_0(%arg0: i32) -> (i32, i32) {
    %c0_i32 = arith.constant 0 : i32
    %c0_i32_0 = arith.constant 0 : i32
    return %arg0, %c0_i32 : i32, i32
  }
  func.func @transform_1(%arg0: i32) -> (i32, i32) {
    %c0_i32 = arith.constant 0 : i32
    %c0_i32_0 = arith.constant 0 : i32
    return %arg0, %c0_i32 : i32, i32
  }
  func.func @transform_2(%arg0: i32) -> (i32, i32) {
    %c0_i32 = arith.constant 0 : i32
    %c0_i32_0 = arith.constant 0 : i32
    return %arg0, %c0_i32 : i32, i32
  }
  func.func @transform_3(%arg0: i32) -> (i32, i32, i32) {
    %c0_i32 = arith.constant 0 : i32
    %c0_i32_0 = arith.constant 0 : i32
    %c0_i32_1 = arith.constant 0 : i32
    %c0_i32_2 = arith.constant 0 : i32
    return %c0_i32, %c0_i32_0, %c0_i32_1 : i32, i32, i32
  }
  func.func @transform_4(%arg0: i32) -> (i32, i32, i32) {
    %c0_i32 = arith.constant 0 : i32
    %c0_i32_0 = arith.constant 0 : i32
    %c0_i32_1 = arith.constant 0 : i32
    %c0_i32_2 = arith.constant 0 : i32
    return %c0_i32, %c0_i32_0, %c0_i32_1 : i32, i32, i32
  }
  func.func @transform_5(%arg0: i32) -> (i32, i32) {
    %c0_i32 = arith.constant 0 : i32
    %c0_i32_0 = arith.constant 0 : i32
    return %arg0, %c0_i32 : i32, i32
  }
  func.func @transform_6(%arg0: i32) -> (i32, i32) {
    %c0_i32 = arith.constant 0 : i32
    %c0_i32_0 = arith.constant 0 : i32
    return %arg0, %c0_i32 : i32, i32
  }
  func.func @transform_7(%arg0: i32) -> (i32, i32) {
    %c0_i32 = arith.constant 0 : i32
    %c0_i32_0 = arith.constant 0 : i32
    return %arg0, %c0_i32 : i32, i32
  }
}

</mosaic_0001>

<bundles_post_ra>
// kernel: tpu_custom_call.1
= control target key start
LH: loop header
LB: loop body
LE: loop exit
PB: predicated region body
PF: predicated region fallthrough
CT: control target
= control target key end

     0   :  { %13 = vsyncpa [#allocation3], 0  ;;  %s517_s0 = inlined_call_operand.hbm [shape: f32[8,32], index: 0, kind: input, shape index: {}]   ;;  %s518_s1 = inlined_call_operand.hbm [shape: f32[8,32], index: 1, kind: input, shape index: {}]   ;;  %s519_s2 = inlined_call_operand.hbm [shape: f32[8,32], index: 2, kind: input, shape index: {}]   ;;  %s520_s3 = inlined_call_operand.hbm [shape: f32[3,32,34], index: 3, kind: input, shape index: {}]   ;;  %s521_s4 = inlined_call_operand.vmem [shape: f32[3,1,34], index: 4, kind: input, shape index: {}]   ;;  %s522_s5 = inlined_call_operand.hbm [shape: bf16[8,34], index: 5, kind: output, shape index: {0}]   ;;  %s523_s6 = inlined_call_operand.hbm [shape: bf16[8,34], index: 6, kind: output, shape index: {1}]   ;;  %s524_s7 = inlined_call_operand.hbm [shape: bf16[8,34], index: 7, kind: output, shape index: {2}]  }
   0x1   :  { %14 = vsyncpa [#allocation6], 0 }
   0x2   :  { %15 = vsyncpa [#allocation9], 0 }
   0x3   :  { %16 = vsyncpa [#allocation4], 0  ;;  %s34_s26 = sshll.u32 %s518_s1, 4  ;;  %s35_s26 = int_to_ptr.hbm [resolvable:$true] %s34_s26 }
   0x4   :  { %17 = vsyncpa [#allocation12], 0  ;;  %s435_s27 = smov [#allocation5]   ;;  %s23_s8 = sshll.u32 %s517_s0, 4  ;;  %s24_s8 = int_to_ptr.hbm [resolvable:$true] %s23_s8 }
   0x5   :  { %s36_s28 = sshll.u32 %s435_s27, 4  ;;  %s436_s9 = smov [#allocation2]   ;;  %s37_s28 = int_to_ptr.vmem [resolvable:$true] %s36_s28 }
   0x6   :  { %39 = dma.hbm_to_vmem [thread:$0]  %s35_s26, 128, %s37_s28, [#allocation6]  }
   0x7   :  { %s25_s10 = sshll.u32 %s436_s9, 4  ;;  %s45_s13 = sshll.u32 %s519_s2, 4  ;;  %s26_s10 = int_to_ptr.vmem [resolvable:$true] %s25_s10  ;;  %s46_s13 = int_to_ptr.hbm [resolvable:$true] %s45_s13 }
   0x8   :  { %28 = dma.hbm_to_vmem [thread:$0]  %s24_s8, 128, %s26_s10, [#allocation3]  }
   0x9   :  { %s55_s15 = sshll.u32 %s520_s3, 4  ;;  %s437_s16 = smov [#allocation7]   ;;  %s56_s15 = int_to_ptr.hbm [resolvable:$true] %s55_s15 }
   0xa   :  { %s47_s17 = sshll.u32 %s437_s16, 4  ;;  %s438_s0 = smov [#allocation8]   ;;  %s48_s17 = int_to_ptr.vmem [resolvable:$true] %s47_s17 }
   0xb   :  { %50 = dma.hbm_to_vmem [thread:$0]  %s46_s13, 128, %s48_s17, [#allocation6]  }
   0xc   :  { %s57_s18 = sshll.u32 %s438_s0, 4  ;;  %s439_s19 = smov 128   ;;  %s58_s18 = int_to_ptr.vmem [resolvable:$true] %s57_s18 }
   0xd   :  { %s440_s20 = smov 8  }
   0xe   :  { %63 = dma.hbm_to_vmem [thread:$0]  %s56_s15, 1536, %s58_s18, [#allocation9], %s439_s19, %s439_s19, %s440_s20  }
   0xf   :  { %425 = dma.done.wait [#allocation3], 128  }
  0x10   :  { %426 = vsyncadd [#allocation3], 4294967168 }
  0x11   :  { %427 = dma.done.wait [#allocation6], 256  }
  0x12   :  { %428 = vsyncadd [#allocation6], 4294967040 }
  0x13   :  { %429 = dma.done.wait [#allocation9], 1536  }
  0x14   :  { %430 = vsyncadd [#allocation9], 4294965760  ;;  %v159_v0 = vld [vmem:[#allocation8 + $0x58] sm:$0xff]  ;;  %v158_v1 = vld [vmem:[#allocation8 + $0x50] sm:$0xff]  ;;  %vm91_vm0 = vcmask 261120   ;;  %s441_s23 = smov [#allocation11]  }
  0x15   :  { %180 = vmatpush.msra.mxu2 %v159_v0  ;;  %v123_v2 = vld [vmem:[#allocation8 + $0x38] sm:$0xff]  ;;  %v157_v4 = vld [vmem:[#allocation8 + $0x48] sm:$0xff]  ;;  %v122_v5 = vld [vmem:[#allocation8 + $0x30] sm:$0xff]  ;;  %s206_s24 = sshll.u32 %s441_s23, 4  ;;  %s208_s27 = sshll.u32 %s523_s6, 4  ;;  %vm116_vm1 = vcmask 273408   ;;  %s207_s24 = int_to_ptr.vmem [resolvable:$true] %s206_s24  ;;  %s209_s27 = int_to_ptr.hbm [resolvable:$true] %s208_s27 }
  0x16   :  { %v86_v3 = vld [vmem:[#allocation8 + $0x18] sm:$0xff]  ;;  %144 = vmatpush.msra.mxu1 %v123_v2  ;;  %v85_v6 = vld [vmem:[#allocation8 + $0x10] sm:$0xff]  ;;  %v121_v7 = vld [vmem:[#allocation8 + $0x28] sm:$0xff]  ;;  %s442_s28 = smov [#allocation10]   ;;  %s197_s9 = sshll.u32 %s522_s5, 4  ;;  %s198_s9 = int_to_ptr.hbm [resolvable:$true] %s197_s9 }
  0x17   :  { %107 = vmatpush.msra.mxu0 %v86_v3  ;;  %181 = vmatpush.msra.mxu2 %v158_v1  ;;  %v84_v8 = vld [vmem:[#allocation8 + $0x8] sm:$0xff]  ;;  %v156_v9 = vld [vmem:[#allocation8 + $0x40] sm:$0xff]  ;;  %v154_v10 = vld [vmem:[#allocation7] sm:$0xff]  ;;  %s195_s29 = sshll.u32 %s442_s28, 4  ;;  %s443_s6 = smov [#allocation13]   ;;  %s196_s29 = int_to_ptr.vmem [resolvable:$true] %s195_s29 }
  0x18   :  { %145 = vmatpush.msra.mxu1 %v122_v5  ;;  %v120_v11 = vld [vmem:[#allocation8 + $0x20] sm:$0xff]  ;;  %v118_v13 = vld [vmem:[#allocation5] sm:$0xff]  ;;  %v82_v14 = vld [vmem:[#allocation2] sm:$0xff]  ;;  %s217_s12 = sshll.u32 %s443_s6, 4  ;;  %s219_s5 = sshll.u32 %s524_s7, 4  ;;  %s218_s12 = int_to_ptr.vmem [resolvable:$true] %s217_s12  ;;  %s220_s5 = int_to_ptr.hbm [resolvable:$true] %s219_s5 }
  0x19   :  { %108 = vmatpush.msra.mxu0 %v85_v6  ;;  %182 = vmatpush.msra.mxu2 %v157_v4  ;;  %v83_v12 = vld [vmem:[#allocation8] sm:$0xff]  ;;  %v254_v15 = vld [vmem:[%s521_s4 + $0x1] ss:$0 sm:$0xff]  ;;  %v255_v16 = vld [vmem:[%s521_s4] ss:$0 sm:$0xff] }
  0x1a   :  { %146 = vmatpush.msra.mxu1 %v121_v7  ;;  %v256_v21 = vld [vmem:[%s521_s4 + $0x2] ss:$0 sm:$0xff] }
  0x1b   :  { %109 = vmatpush.msra.mxu0 %v84_v8  ;;  %183 = vmatpush.msra.mxu2 %v156_v9 }
  0x1c   :  { %244 = vmatmul.msk.f32.vlgmr.msra.gmra.mxu2 %vm91_vm0, %v154_v10  ;;  %147 = vmatpush.msra.mxu1 %v120_v11 }
  0x1d   :  { %110 = vmatpush.msra.mxu0 %v83_v12  ;;  %242 = vmatmul.msk.f32.vlgmr.msra.gmra.mxu1 %vm91_vm0, %v118_v13 }
  0x1e   :  { %240 = vmatmul.msk.f32.vlgmr.msra.gmra.mxu0 %vm91_vm0, %v82_v14 }
  0x9a   :  { %v149_v17 = vpop.f32.mrf.mxu1 }
  0x9b   :  { %v150_v18 = vadd.f32 %v254_v15, %v149_v17  ;;  %v112_v19 = vpop.f32.mrf.mxu0 }
  0x9c   :  { %v113_v20 = vadd.f32 %v255_v16, %v112_v19 }
  0x9d   :  { %v152_v22 = vpack.c.bf16 %v150_v18, %v150_v18 }
  0x9e   :  { %v115_v23 = vpack.c.bf16 %v113_v20, %v113_v20 }
  0x9f   :  { %v185_v24 = vpop.f32.mrf.mxu2  ;;  %153 = vst.msk [vmem:[#allocation11] sm:$0xf] %vm116_vm1, %v152_v22 }
  0xa0   :  { %v186_v25 = vadd.f32 %v256_v21, %v185_v24  ;;  %117 = vst.msk [vmem:[#allocation10] sm:$0xf] %vm116_vm1, %v115_v23  ;;  %211 = dma.vmem_to_hbm [thread:$0]  %s207_s24, 64, %s209_s27, [#allocation12]  }
  0xa1   :  { %200 = dma.vmem_to_hbm [thread:$0]  %s196_s29, 64, %s198_s9, [#allocation4]  }
  0xa2   :  { %v188_v26 = vpack.c.bf16 %v186_v25, %v186_v25 }
  0xa4   :  { %189 = vst.msk [vmem:[#allocation13] sm:$0xf] %vm116_vm1, %v188_v26 }
  0xa5   :  { %222 = dma.vmem_to_hbm [thread:$0]  %s218_s12, 64, %s220_s5, [#allocation12]  }
  0xa6   :  { %431 = dma.done.wait [#allocation4], 64  }
  0xa7   :  { %432 = vsyncadd [#allocation4], 4294967232 }
  0xa8   :  { %433 = dma.done.wait [#allocation12], 128  }
  0xa9   :  { %434 = vsyncadd [#allocation12], 4294967168 }
  0xaa   :  { %235 = vsyncpa [#allocation3], 1 }
  0xab   :  { %236 = vsyncpa [#allocation6], 1 }
  0xac   :  { %237 = vsyncpa [#allocation9], 1 }
  0xad   :  { %238 = vsyncpa [#allocation4], 1 }
  0xae   :  { %239 = vsyncpa [#allocation12], 1 }

</bundles_post_ra>
